<compile_context>
chip_gen: v7x
topology: tpu7x:2x2x1
jax: 0.10.0
libtpu: 0.0.40
codegen_flags: <defaults>
</compile_context>

<pallas_src>
import jax
import jax.numpy as jnp
from jax import lax
from jax.experimental import pallas as pl
from jax.experimental.pallas import tpu as pltpu


def _make_kernel(nb, hid_chunk, n_chunks):
    """Kernel over a (nb, C_in, tp) activation block, channels-first."""
    dn2 = (((0,), (0,)), ((), ()))  # contract C_hid of (C_hid,C_out) x (C_hid,tp)

    def kernel(x_ref, w1t_ref, b1_ref, w2m_ref, b2_ref, o_ref):
        # x_ref:   (nb, C_in, tp)      activations, pixels in lanes
        # w1t_ref: (C_hid_p, C_in)     fc1 weight transposed (resident)
        # b1_ref:  (C_hid_p, 1)        fc1 bias (f32)
        # w2m_ref: (C_hid_p, C_out)    fc2 weight, C_hid leading (resident)
        # b2_ref:  (C_out, 1)          fc2 bias (f32)
        # o_ref:   (nb, C_out, tp)
        c_out = o_ref.shape[1]
        tp = x_ref.shape[-1]

        def one_row(n):
            x = x_ref[n]                                            # (C_in, tp)
            if n_chunks == 1:
                h = jnp.dot(w1t_ref[...], x,
                            preferred_element_type=jnp.float32)
                h = jnp.maximum(h + b1_ref[...], 0.0).astype(w2m_ref.dtype)
                acc = lax.dot_general(w2m_ref[...], h, dn2,
                                      preferred_element_type=jnp.float32)
            else:
                def body(c, acc):
                    off = pl.multiple_of(c * hid_chunk, hid_chunk)
                    h = jnp.dot(w1t_ref[pl.ds(off, hid_chunk), :], x,
                                preferred_element_type=jnp.float32)
                    h = jnp.maximum(h + b1_ref[pl.ds(off, hid_chunk), :], 0.0)
                    h = h.astype(w2m_ref.dtype)
                    return acc + lax.dot_general(
                        w2m_ref[pl.ds(off, hid_chunk), :], h, dn2,
                        preferred_element_type=jnp.float32)

                acc = lax.fori_loop(0, n_chunks, body,
                                    jnp.zeros((c_out, tp), jnp.float32))
            o_ref[n] = (acc + b2_ref[...]).astype(o_ref.dtype)

        if nb == 1:
            one_row(0)
        elif nb <= 8:
            for n in range(nb):            # small static unroll over the batch
                one_row(n)
        else:
            @pl.loop(0, nb)
            def _(n):
                one_row(n)

    return kernel


def conv_mlp(x_nchw, w1, b1, w2, b2, *, hid_chunk_rows=None):
    """ConvMlp forward.  x_nchw: (N, C_in, H, W); w1: (C_in, C_hid); w2: (C_hid, C_out)."""
    N, C_in, H, W = x_nchw.shape
    C_hid = w1.shape[1]
    C_out = w2.shape[1]
    HW = H * W

    dtype = x_nchw.dtype
    itemsize = jnp.dtype(dtype).itemsize

    # Channels-first view: free reshape, no activation transposes.
    x_flat = x_nchw.reshape(N, C_in, HW)

    # Weight prep (tiny, done once, outside the kernel).
    w1t = jnp.asarray(w1).T.astype(dtype)                  # (C_hid, C_in)
    w2m = jnp.asarray(w2).astype(dtype)                    # (C_hid, C_out)
    b1c = jnp.asarray(b1).reshape(C_hid, 1).astype(jnp.float32)
    b2c = jnp.asarray(b2).reshape(C_out, 1).astype(jnp.float32)

    # --- per-generation VMEM sizing ------------------------------------------
    vmem_cap = 64 * 1024 * 1024                            # conservative (v7x) default
    try:
        cap = getattr(pltpu.get_tpu_info(), "vmem_capacity_bytes", None)
        if cap:
            vmem_cap = int(cap)
    except Exception:
        pass
    vmem_limit = int(min(vmem_cap * 3 // 4, vmem_cap - 8 * 1024 * 1024))
    vmem_budget = vmem_limit - 6 * 1024 * 1024             # headroom for Mosaic scratch
    hid_bytes_cap = max(vmem_budget // 3, 1 << 20)

    if hid_chunk_rows is not None:
        hid_chunk_rows = max(8, (int(hid_chunk_rows) // 8) * 8)

    weight_bytes = (w1t.size + w2m.size) * itemsize + (b1c.size + b2c.size) * 4

    def chunk_rows(tp):
        if hid_chunk_rows is not None:
            return int(min(C_hid, hid_chunk_rows))
        if C_hid <= 128 or C_hid * tp * 4 <= hid_bytes_cap:
            return C_hid
        r = (hid_bytes_cap // (tp * 4)) // 128 * 128
        return int(min(C_hid, max(128, r)))

    def fits(nb, tp):
        act = 2 * nb * tp * (C_in + C_out) * itemsize      # double-buffered x/out blocks
        hid = tp * chunk_rows(tp) * 4                      # one row's f32 hidden chunk
        acc = tp * C_out * 4                               # f32 accumulator
        return act + hid + acc + 2 * weight_bytes <= vmem_budget

    hw_blocks = pl.cdiv(HW, 128)
    hw_ceil = hw_blocks * 128

    def max_tp(nb):
        if HW <= 128:
            return HW                                      # full-extent pixel block
        for cand in range(hw_ceil, 127, -128):
            if fits(nb, cand):
                return cand
        return 128

    payload_target = 1 << 20      # ~1 MiB of HBM traffic per grid step
    split_threshold = 2 << 20     # split single-step grids above this (feed both v7x TCs)
    total_act_bytes = N * HW * (C_in + C_out) * itemsize

    tp = max_tp(1)
    fold = False
    if N > 1 and tp * (C_in + C_out) * itemsize < payload_target:
        tp_fold = max_tp(N)
        if tp_fold >= min(HW, 128):
            fold, tp = True, tp_fold

    nb = N if fold else 1
    nt = pl.cdiv(HW, tp)
    n_par = nt if fold else N * nt
    if n_par == 1 and total_act_bytes >= split_threshold and hw_blocks >= 2:
        tp = pl.cdiv(hw_blocks, 2) * 128                   # >= 2 parallel steps
        nt = pl.cdiv(HW, tp)

    # --- hidden-dim chunking (f32 intermediate never fully materializes) -----
    hid_chunk = chunk_rows(tp)
    if hid_chunk < C_hid:
        c_hid_p = pl.cdiv(C_hid, hid_chunk) * hid_chunk
        if c_hid_p != C_hid:                               # zero-pad: exact (relu(0)=0, w2 pad=0)
            pad = c_hid_p - C_hid
            w1t = jnp.pad(w1t, ((0, pad), (0, 0)))
            w2m = jnp.pad(w2m, ((0, pad), (0, 0)))
            b1c = jnp.pad(b1c, ((0, pad), (0, 0)))
        n_chunks = c_hid_p // hid_chunk
    else:
        c_hid_p = C_hid
        n_chunks = 1

    if fold:
        grid = (nt,)
        x_map = lambda p: (0, 0, p)
        o_map = lambda p: (0, 0, p)
        cmap = lambda p: (0, 0)
    else:
        grid = (N, nt)
        x_map = lambda n, p: (n, 0, p)
        o_map = lambda n, p: (n, 0, p)
        cmap = lambda n, p: (0, 0)

    cost = pl.CostEstimate(
        flops=int(2 * N * HW * (C_in * C_hid + C_hid * C_out)),
        transcendentals=0,
        bytes_accessed=int(N * HW * (C_in + C_out) * itemsize + weight_bytes),
    )

    out_flat = pl.pallas_call(
        _make_kernel(nb, hid_chunk, n_chunks),
        out_shape=jax.ShapeDtypeStruct((N, C_out, HW), dtype),
        grid_spec=pltpu.PrefetchScalarGridSpec(
            num_scalar_prefetch=0,
            grid=grid,
            in_specs=[
                pl.BlockSpec((nb, C_in, tp), x_map),
                pl.BlockSpec((c_hid_p, C_in), cmap),
                pl.BlockSpec((c_hid_p, 1), cmap),
                pl.BlockSpec((c_hid_p, C_out), cmap),
                pl.BlockSpec((C_out, 1), cmap),
            ],
            out_specs=pl.BlockSpec((nb, C_out, tp), o_map),
        ),
        compiler_params=pltpu.CompilerParams(
            dimension_semantics=("parallel",) * len(grid),
            vmem_limit_bytes=int(vmem_limit),
        ),
        cost_estimate=cost,
    )(x_flat, w1t, b1c, w2m, b2c)

    return out_flat.reshape(N, C_out, H, W)


def _reference(x, w1, b1, w2, b2):
    # Pure-JAX reference: 1x1 convs are per-pixel channel matmuls.
    h = jnp.einsum("nchw,cd->ndhw", x, w1) + b1[None, :, None, None]
    h = jnp.maximum(h, 0.0)
    return jnp.einsum("ndhw,de->nehw", h, w2) + b2[None, :, None, None]


if __name__ == "__main__":
    key = jax.random.PRNGKey(0)

    # ---- Test 1: module-consistent small shapes (128-aligned H*W) ----------
    N, C_in, H, W = 2, 4, 16, 16
    C_hid, C_out = 32, 4
    k = jax.random.split(key, 10)
    x = jax.random.normal(k[0], (N, C_in, H, W), dtype=jnp.float32)
    w1 = jax.random.normal(k[1], (C_in, C_hid), dtype=jnp.float32) * 0.1
    b1 = jax.random.normal(k[2], (C_hid,), dtype=jnp.float32) * 0.1
    w2 = jax.random.normal(k[3], (C_hid, C_out), dtype=jnp.float32) * 0.1
    b2 = jax.random.normal(k[4], (C_out,), dtype=jnp.float32) * 0.1

    out = jax.block_until_ready(conv_mlp(x, w1, b1, w2, b2))
    ref = _reference(x, w1, b1, w2, b2)
    assert out.shape == (N, C_out, H, W)
    assert jnp.allclose(out, ref, atol=1e-4, rtol=1e-4)

    # ---- Test 2: ragged H*W (130 px), odd channels, forced hidden chunking --
    N2, C_in2, H2, W2 = 3, 5, 10, 13
    C_hid2, C_out2 = 40, 7
    x2 = jax.random.normal(k[5], (N2, C_in2, H2, W2), dtype=jnp.float32)
    w1_2 = jax.random.normal(k[6], (C_in2, C_hid2), dtype=jnp.float32) * 0.1
    b1_2 = jax.random.normal(k[7], (C_hid2,), dtype=jnp.float32) * 0.1
    w2_2 = jax.random.normal(k[8], (C_hid2, C_out2), dtype=jnp.float32) * 0.1
    b2_2 = jax.random.normal(k[9], (C_out2,), dtype=jnp.float32) * 0.1

    out2 = jax.block_until_ready(
        conv_mlp(x2, w1_2, b1_2, w2_2, b2_2, hid_chunk_rows=16))
    ref2 = _reference(x2, w1_2, b1_2, w2_2, b2_2)
    assert out2.shape == (N2, C_out2, H2, W2)
    assert jnp.allclose(out2, ref2, atol=1e-4, rtol=1e-4)

    print("KERNEL_OK")
</pallas_src>

<mosaic_0001>
module attributes {stable_mosaic.version = 11 : i64} {
  func.func @kernel(%arg0: i32, %arg1: memref<2x4x256xf32, #tpu.memory_space<vmem>>, %arg2: memref<32x4xf32, #tpu.memory_space<vmem>>, %arg3: memref<32x1xf32, #tpu.memory_space<vmem>>, %arg4: memref<32x4xf32, #tpu.memory_space<vmem>>, %arg5: memref<4x1xf32, #tpu.memory_space<vmem>>, %arg6: memref<2x4x256xf32, #tpu.memory_space<vmem>>) attributes {dimension_semantics = [#tpu.dimension_semantics<parallel>], iteration_bounds = array<i64: 1>, scalar_prefetch = 0 : i64, scratch_operands = 0 : i64, tpu.core_type = #tpu.core_type<tc>, window_params = [{transform_indices = @transform_0, window_bounds = array<i64: 2, 4, 256>}, {pipeline_mode = #tpu.pipeline_mode<synchronous>, transform_indices = @transform_1, window_bounds = array<i64: 32, 4>}, {pipeline_mode = #tpu.pipeline_mode<synchronous>, transform_indices = @transform_2, window_bounds = array<i64: 32, 1>}, {pipeline_mode = #tpu.pipeline_mode<synchronous>, transform_indices = @transform_3, window_bounds = array<i64: 32, 4>}, {pipeline_mode = #tpu.pipeline_mode<synchronous>, transform_indices = @transform_4, window_bounds = array<i64: 4, 1>}, {transform_indices = @transform_5, window_bounds = array<i64: 2, 4, 256>}]} {
    %c0 = arith.constant 0 : index
    %c0_0 = arith.constant 0 : index
    %c0_1 = arith.constant 0 : index
    %0 = vector.load %arg1[%c0, %c0_0, %c0_1] : memref<2x4x256xf32, #tpu.memory_space<vmem>>, vector<1x4x256xf32>
    %1 = vector.shape_cast %0 : vector<1x4x256xf32> to vector<4x256xf32>
    %c0_2 = arith.constant 0 : index
    %c0_3 = arith.constant 0 : index
    %2 = vector.load %arg2[%c0_2, %c0_3] : memref<32x4xf32, #tpu.memory_space<vmem>>, vector<32x4xf32>
    %cst = arith.constant dense<0.000000e+00> : vector<32x256xf32>
    %3 = tpu.matmul %2, %1, %cst {dimension_numbers = #tpu.dot_dimension_numbers<[1], [0], [0], [1], [0, 0, 1, 1], [], []>} : vector<32x4xf32>, vector<4x256xf32>, vector<32x256xf32> -> vector<32x256xf32>
    %c0_4 = arith.constant 0 : index
    %c0_5 = arith.constant 0 : index
    %4 = vector.load %arg3[%c0_4, %c0_5] : memref<32x1xf32, #tpu.memory_space<vmem>>, vector<32x1xf32>
    %5 = vector.broadcast %4 : vector<32x1xf32> to vector<32x256xf32>
    %6 = arith.addf %3, %5 : vector<32x256xf32>
    %cst_6 = arith.constant 0.000000e+00 : f32
    %7 = vector.broadcast %cst_6 : f32 to vector<32x256xf32>
    %8 = arith.maximumf %6, %7 : vector<32x256xf32>
    %c0_7 = arith.constant 0 : index
    %c0_8 = arith.constant 0 : index
    %9 = vector.load %arg4[%c0_7, %c0_8] : memref<32x4xf32, #tpu.memory_space<vmem>>, vector<32x4xf32>
    %cst_9 = arith.constant dense<0.000000e+00> : vector<4x256xf32>
    %10 = tpu.matmul %9, %8, %cst_9 {dimension_numbers = #tpu.dot_dimension_numbers<[0], [0], [1], [1], [0, 1, 1, 1], [], []>} : vector<32x4xf32>, vector<32x256xf32>, vector<4x256xf32> -> vector<4x256xf32>
    %c0_10 = arith.constant 0 : index
    %c0_11 = arith.constant 0 : index
    %11 = vector.load %arg5[%c0_10, %c0_11] : memref<4x1xf32, #tpu.memory_space<vmem>>, vector<4x1xf32>
    %12 = vector.broadcast %11 : vector<4x1xf32> to vector<4x256xf32>
    %13 = arith.addf %10, %12 : vector<4x256xf32>
    %c0_12 = arith.constant 0 : index
    %c0_13 = arith.constant 0 : index
    %c0_14 = arith.constant 0 : index
    %14 = vector.load %arg6[%c0_12, %c0_13, %c0_14] : memref<2x4x256xf32, #tpu.memory_space<vmem>>, vector<1x4x256xf32>
    %15 = vector.shape_cast %14 : vector<1x4x256xf32> to vector<4x256xf32>
    %16 = vector.shape_cast %13 : vector<4x256xf32> to vector<1x4x256xf32>
    tpu.vector_store %arg6[%c0_12, %c0_13, %c0_14], %16 {strides = array<i32>} : memref<2x4x256xf32, #tpu.memory_space<vmem>>, vector<1x4x256xf32>,
    %c1 = arith.constant 1 : index
    %c0_15 = arith.constant 0 : index
    %c0_16 = arith.constant 0 : index
    %17 = vector.load %arg1[%c1, %c0_15, %c0_16] : memref<2x4x256xf32, #tpu.memory_space<vmem>>, vector<1x4x256xf32>
    %18 = vector.shape_cast %17 : vector<1x4x256xf32> to vector<4x256xf32>
    %c0_17 = arith.constant 0 : index
    %c0_18 = arith.constant 0 : index
    %19 = vector.load %arg2[%c0_17, %c0_18] : memref<32x4xf32, #tpu.memory_space<vmem>>, vector<32x4xf32>
    %cst_19 = arith.constant dense<0.000000e+00> : vector<32x256xf32>
    %20 = tpu.matmul %19, %18, %cst_19 {dimension_numbers = #tpu.dot_dimension_numbers<[1], [0], [0], [1], [0, 0, 1, 1], [], []>} : vector<32x4xf32>, vector<4x256xf32>, vector<32x256xf32> -> vector<32x256xf32>
    %c0_20 = arith.constant 0 : index
    %c0_21 = arith.constant 0 : index
    %21 = vector.load %arg3[%c0_20, %c0_21] : memref<32x1xf32, #tpu.memory_space<vmem>>, vector<32x1xf32>
    %22 = vector.broadcast %21 : vector<32x1xf32> to vector<32x256xf32>
    %23 = arith.addf %20, %22 : vector<32x256xf32>
    %cst_22 = arith.constant 0.000000e+00 : f32
    %24 = vector.broadcast %cst_22 : f32 to vector<32x256xf32>
    %25 = arith.maximumf %23, %24 : vector<32x256xf32>
    %c0_23 = arith.constant 0 : index
    %c0_24 = arith.constant 0 : index
    %26 = vector.load %arg4[%c0_23, %c0_24] : memref<32x4xf32, #tpu.memory_space<vmem>>, vector<32x4xf32>
    %cst_25 = arith.constant dense<0.000000e+00> : vector<4x256xf32>
    %27 = tpu.matmul %26, %25, %cst_25 {dimension_numbers = #tpu.dot_dimension_numbers<[0], [0], [1], [1], [0, 1, 1, 1], [], []>} : vector<32x4xf32>, vector<32x256xf32>, vector<4x256xf32> -> vector<4x256xf32>
    %c0_26 = arith.constant 0 : index
    %c0_27 = arith.constant 0 : index
    %28 = vector.load %arg5[%c0_26, %c0_27] : memref<4x1xf32, #tpu.memory_space<vmem>>, vector<4x1xf32>
    %29 = vector.broadcast %28 : vector<4x1xf32> to vector<4x256xf32>
    %30 = arith.addf %27, %29 : vector<4x256xf32>
    %c1_28 = arith.constant 1 : index
    %c0_29 = arith.constant 0 : index
    %c0_30 = arith.constant 0 : index
    %31 = vector.load %arg6[%c1_28, %c0_29, %c0_30] : memref<2x4x256xf32, #tpu.memory_space<vmem>>, vector<1x4x256xf32>
    %32 = vector.shape_cast %31 : vector<1x4x256xf32> to vector<4x256xf32>
    %33 = vector.shape_cast %30 : vector<4x256xf32> to vector<1x4x256xf32>
    tpu.vector_store %arg6[%c1_28, %c0_29, %c0_30], %33 {strides = array<i32>} : memref<2x4x256xf32, #tpu.memory_space<vmem>>, vector<1x4x256xf32>,
    return
  }
  func.func @transform_0(%arg0: i32) -> (i32, i32, i32) {
    %c0_i32 = arith.constant 0 : i32
    %c0_i32_0 = arith.constant 0 : i32
    %c0_i32_1 = arith.constant 0 : i32
    return %c0_i32, %c0_i32_0, %arg0 : i32, i32, i32
  }
  func.func @transform_1(%arg0: i32) -> (i32, i32) {
    %c0_i32 = arith.constant 0 : i32
    %c0_i32_0 = arith.constant 0 : i32
    %c0_i32_1 = arith.constant 0 : i32
    return %c0_i32, %c0_i32_0 : i32, i32
  }
  func.func @transform_2(%arg0: i32) -> (i32, i32) {
    %c0_i32 = arith.constant 0 : i32
    %c0_i32_0 = arith.constant 0 : i32
    %c0_i32_1 = arith.constant 0 : i32
    return %c0_i32, %c0_i32_0 : i32, i32
  }
  func.func @transform_3(%arg0: i32) -> (i32, i32) {
    %c0_i32 = arith.constant 0 : i32
    %c0_i32_0 = arith.constant 0 : i32
    %c0_i32_1 = arith.constant 0 : i32
    return %c0_i32, %c0_i32_0 : i32, i32
  }
  func.func @transform_4(%arg0: i32) -> (i32, i32) {
    %c0_i32 = arith.constant 0 : i32
    %c0_i32_0 = arith.constant 0 : i32
    %c0_i32_1 = arith.constant 0 : i32
    return %c0_i32, %c0_i32_0 : i32, i32
  }
  func.func @transform_5(%arg0: i32) -> (i32, i32, i32) {
    %c0_i32 = arith.constant 0 : i32
    %c0_i32_0 = arith.constant 0 : i32
    %c0_i32_1 = arith.constant 0 : i32
    return %c0_i32, %c0_i32_0, %arg0 : i32, i32, i32
  }
}

</mosaic_0001>

<bundles_post_ra>
// kernel: tpu_custom_call.1
= control target key start
LH: loop header
LB: loop body
LE: loop exit
PB: predicated region body
PF: predicated region fallthrough
CT: control target
= control target key end

     0   :  { %vm65_vm0 = vcmask 1043456   ;;  %v636_v3 = vmov 0   ;;  %vm52_vm1 = vcmask 31744   ;;  %v637_v6 = vmov 0.0   ;;  %s771_s0 = inlined_call_operand.vmem [shape: f32[2,4,256], index: 0, kind: input, shape index: {}]   ;;  %s772_s1 = inlined_call_operand.vmem [shape: f32[32,4], index: 1, kind: input, shape index: {}]   ;;  %s773_s2 = inlined_call_operand.vmem [shape: f32[32,1], index: 2, kind: input, shape index: {}]   ;;  %s774_s3 = inlined_call_operand.vmem [shape: f32[32,4], index: 3, kind: input, shape index: {}]   ;;  %s775_s4 = inlined_call_operand.vmem [shape: f32[4,1], index: 4, kind: input, shape index: {}]   ;;  %s776_s5 = inlined_call_operand.hbm [shape: f32[2,4,256], index: 5, kind: output, shape index: {}]  }
   0x1   :  { %v28_v0 = vld [vmem:[%s773_s2 + $0x10] sm:$0xff]  ;;  %v26_v1 = vld [vmem:[%s773_s2] sm:$0xff]  ;;  %609 = vset.pattern.permute.xlu1 %v636_v3  ;;  %608 = vset.pattern.permute.xlu0 %v636_v3  ;;  %v29_v7 = vld [vmem:[%s773_s2 + $0x18] sm:$0xff] }
   0x2   :  { %v21_v2 = vld [vmem:[%s771_s0] sm:$0xff]  ;;  %42 = vperm.xlu1 %609, %v28_v0   ;;  %32 = vperm.xlu0 %608, %v26_v1   ;;  %v27_v8 = vld [vmem:[%s773_s2 + $0x8] sm:$0xff] }
   0x3   :  { %v51_v4 = vcombine.high %v21_v2, %v21_v2  ;;  %v683_v5 = vld [vmem:[%s772_s1] sm:$0xff]  ;;  %134 = vmatprep.mubr.f32.mxu0 %v637_v6  ;;  %277 = vmatprep.mubr.f32.mxu1 %v637_v6 }
   0x5   :  { %572 = vmatprep.subr.msk.mxu0 %vm65_vm0, %v51_v4 }
   0x6   :  { %573 = vmatpush1.msk.msra.mxu0 %vm65_vm0, %v21_v2 }
   0x7   :  { %574 = vmatmul.mubr.msk.f32.vlgmr.msra.gmra.mrb[0].mxu0 %vm52_vm1, %v683_v5 }
   0x8   :  { %10 = vsyncpa [#allocation3], 0  ;;  %47 = vperm.xlu1 %609, %v29_v7   ;;  %37 = vperm.xlu0 %608, %v27_v8   ;;  %v700_v9 = vld [vmem:[%s772_s1 + $0x8] sm:$0xff]  ;;  %v709_v10 = vld [vmem:[%s772_s1 + $0x10] sm:$0xff]  ;;  %vm209_vm2 = vcmask 261120  }
   0x9   :  { %140 = vmatprep.mubr.f32.mxu0 %v637_v6  ;;  %v717_v11 = vld [vmem:[%s772_s1 + $0x18] sm:$0xff]  ;;  %v167_v12 = vld [vmem:[%s774_s3] sm:$0xff]  ;;  %v168_v13 = vld [vmem:[%s774_s3 + $0x8] sm:$0xff] }
   0xa   :  { %v169_v14 = vld [vmem:[%s774_s3 + $0x10] sm:$0xff]  ;;  %v170_v15 = vld [vmem:[%s774_s3 + $0x18] sm:$0xff]  ;;  %v171_v16 = vld [vmem:[%s775_s4] sm:$0xf] }
   0xb   :  { %575 = vmatmul.mubr.msk.f32.gmra.mrb[2].mxu0 %vm52_vm1, %v700_v9  ;;  %v438_v17 = vld [vmem:[%s775_s4] sm:$0xf]  ;;  %v579_v46 = vld [vmem:[%s771_s0 + $0x8] sm:$0xff]  ;;  %s638_s0 = smov [#allocation2]  }
   0xc   :  { %301 = vperm.xlu1 %609, %v26_v1   ;;  %146 = vmatprep.mubr.f32.mxu0 %v637_v6  ;;  %v320_v51 = vcombine.high %v579_v46, %v579_v46  ;;  %s561_s21 = sshll.u32 %s638_s0, 4  ;;  %s562_s21 = int_to_ptr.vmem [resolvable:$true] %s561_s21 }
   0xd   :  { %s612_s22 = scalar_lea.vmem %s562_s21, 256  ;;  %p617_p1 = scmp.lt.s32.totalorder %s562_s21, %s562_s21 }
   0xe   :  { %p613_p0 = scmp.ne.s32.totalorder %s562_s21, %s612_s22  ;;  %p618_p2 = scmp.lt.s32.totalorder %s612_s22, %s612_s22 }
   0xf   :  { %576 = vmatmul.mubr.msk.f32.gmra.mrb[4].mxu0 %vm52_vm1, %v709_v10 }
  0x10   :  { %306 = vperm.xlu1 %609, %v27_v8   ;;  %152 = vmatprep.mubr.f32.mxu0 %v637_v6  ;;  %p619_p3 = por %p618_p2, %p617_p1 }
  0x12   :  { %p620_p4 = pnand %p619_p3, %p613_p0 }
  0x13   :  { %577 = vmatmul.mubr.msk.f32.gmra.mrb[6].mxu0 %vm52_vm1, %v717_v11 }
  0x14   :  { %311 = vperm.xlu1 %609, %v28_v0   ;;  %543 = vmatprep.mubr.f32.mxu0 %v637_v6 }
  0x18   :  { %316 = vperm.xlu1 %609, %v29_v7  }
  0x26   :  { %177 = vxpose.xlu0.b32.start [1/4] (short) (narrow) %v167_v12, 8 }
  0x2a   :  { %178 = vxpose.xlu0.b32.cont [2/4] (short) (narrow) %v168_v13, 8 }
  0x2e   :  { %179 = vxpose.xlu0.b32.cont [3/4] (short) (narrow) %v169_v14, 8 }
  0x32   :  { %180 = vxpose.xlu0.b32.end [4/4] (short) (narrow) %v170_v15, 8 }
  0x41   :  { %444 = vxpose.xlu1.b32.start [1/4] (short) (narrow) %v167_v12, 8 }
  0x45   :  { %445 = vxpose.xlu1.b32.cont [2/4] (short) (narrow) %v168_v13, 8 }
  0x49   :  { %446 = vxpose.xlu1.b32.cont [3/4] (short) (narrow) %v169_v14, 8 }
  0x4d   :  { %447 = vxpose.xlu1.b32.end [4/4] (short) (narrow) %v170_v15, 8 }
  0x5b   :  { %174 = vperm.xlu0 %608, %v171_v16  }
  0x6b   :  { %441 = vperm.xlu1 %609, %v438_v17  }
  0x81   :  { %v33_v18 = vpop.permute.xlu0 %32  ;;  %v43_v27 = vpop.permute.xlu1 %42 }
  0x87   :  { %v38_v22 = vpop.permute.xlu0 %37  ;;  %v48_v38 = vpop.permute.xlu1 %47 }
  0x8b   :  { %v302_v53 = vpop.permute.xlu1 %301 }
  0x8f   :  { %v307_v59 = vpop.permute.xlu1 %306 }
  0x93   :  { %v312_v4 = vpop.permute.xlu1 %311 }
  0x97   :  { %v317_v15 = vpop.permute.xlu1 %316 }
  0xa6   :  { %v193_v52 = vpop.trf.xlu0 }
  0xda   :  { %v136_v19 = vpop.f32.mrb[0].mxu0  ;;  %v175_v54 = vpop.permute.xlu0 %174 }
  0xdb   :  { %v138_v20 = vpop.f32.mrb[1].mxu0  ;;  %v137_v21 = vadd.f32 %v136_v19, %v33_v18 }
  0xdc   :  { %v139_v23 = vadd.f32 %v138_v20, %v33_v18 }
  0xdd   :  { %v159_v29 = vmax.f32 %v137_v21, 0.0 }
  0xde   :  { %v142_v24 = vpop.f32.mrb[2].mxu0  ;;  %v160_v31 = vmax.f32 %v139_v23, 0.0 }
  0xdf   :  { %v143_v25 = vadd.f32 %v142_v24, %v38_v22  ;;  %v144_v26 = vpop.f32.mrb[3].mxu0 }
  0xe0   :  { %v145_v28 = vadd.f32 %v144_v26, %v38_v22 }
  0xe1   :  { %v161_v30 = vmax.f32 %v143_v25, 0.0 }
  0xe2   :  { %v162_v32 = vmax.f32 %v145_v28, 0.0  ;;  %v148_v33 = vpop.f32.mrb[4].mxu0 }
  0xe3   :  { %v150_v34 = vpop.f32.mrb[5].mxu0  ;;  %v589_v35 = vpack.c.bf16 %v161_v30, %v159_v29  ;;  %v149_v37 = vadd.f32 %v148_v33, %v43_v27 }
  0xe4   :  { %v587_v36 = vpack.c.bf16 %v162_v32, %v160_v31  ;;  %v151_v39 = vadd.f32 %v150_v34, %v43_v27  ;;  %v460_v27 = vpop.trf.xlu1 }
  0xe5   :  { %v163_v44 = vmax.f32 %v149_v37, 0.0 }
  0xe6   :  { %v154_v40 = vpop.f32.mrb[6].mxu0  ;;  %588 = vmatprep.subr.bf16.mxu1 %v587_v36  ;;  %v164_v47 = vmax.f32 %v151_v39, 0.0 }
  0xe7   :  { %v155_v41 = vadd.f32 %v154_v40, %v48_v38  ;;  %v156_v42 = vpop.f32.mrb[7].mxu0  ;;  %590 = vmatpush1.bf16.msra.mxu1 %v589_v35 }
  0xe8   :  { %v157_v43 = vadd.f32 %v156_v42, %v48_v38 }
  0xe9   :  { %v165_v45 = vmax.f32 %v155_v41, 0.0 }
  0xea   :  { %v166_v48 = vmax.f32 %v157_v43, 0.0  ;;  %v442_v28 = vpop.permute.xlu1 %441 }
  0xeb   :  { %v593_v49 = vpack.c.bf16 %v165_v45, %v163_v44 }
  0xec   :  { %v591_v50 = vpack.c.bf16 %v166_v48, %v164_v47 }
  0xee   :  { %592 = vmatprep.subr.bf16.mxu1 %v591_v50 }
  0xef   :  { %594 = vmatpush1.bf16.msra.mxu1 %v593_v49 }
  0xf0   :  { %580 = vmatprep.subr.msk.mxu1 %vm65_vm0, %v320_v51 }
  0xf2   :  { %578 = vmatmul.mubr.msk.f32.vlgmr.msra.gmra.mrb[0].mxu1 %vm209_vm2, %v193_v52 }
  0xf3   :  { %581 = vmatpush1.msk.msra.mxu1 %vm65_vm0, %v579_v46  ;;  %401 = vmatprep.mubr.f32.mxu1 %v637_v6 }
  0xf6   :  { %582 = vmatmul.mubr.msk.f32.vlgmr.msra.gmra.mrb[2].mxu1 %vm52_vm1, %v683_v5 }
  0xf7   :  { %407 = vmatprep.mubr.f32.mxu1 %v637_v6 }
  0xfa   :  { %583 = vmatmul.mubr.msk.f32.gmra.mrb[4].mxu1 %vm52_vm1, %v700_v9 }
  0xfb   :  { %413 = vmatprep.mubr.f32.mxu1 %v637_v6 }
  0xfe   :  { %584 = vmatmul.mubr.msk.f32.gmra.mrb[6].mxu1 %vm52_vm1, %v709_v10 }
  0xff   :  { %419 = vmatprep.mubr.f32.mxu1 %v637_v6 }
 0x102   :  { %585 = vmatmul.mubr.msk.f32.gmra.mrb[8].mxu1 %vm52_vm1, %v717_v11 }
 0x1c5   :  { %v279_v55 = vpop.f32.mrb[0].mxu1 }
 0x1c6   :  { %v280_v56 = vadd.f32 %v279_v55, %v175_v54  ;;  %v281_v57 = vpop.f32.mrb[1].mxu1 }
 0x1c7   :  { %v282_v58 = vadd.f32 %v281_v57, %v175_v54 }
 0x1c9   :  { %v286_v60 = vcombine.low %v280_v56, %v282_v58  ;;  %v403_v61 = vpop.f32.mrb[2].mxu1 }
 0x1ca   :  { %v405_v62 = vpop.f32.mrb[3].mxu1  ;;  %v404_v63 = vadd.f32 %v403_v61, %v302_v53 }
 0x1cb   :  { %288 = vst [vmem:[#allocation2] sm:$0xff] %v286_v60  ;;  %v406_v0 = vadd.f32 %v405_v62, %v302_v53 }
 0x1cc   :  { %v426_v6 = vmax.f32 %v404_v63, 0.0 }
 0x1cd   :  { %v409_v1 = vpop.f32.mrb[4].mxu1  ;;  %v427_v8 = vmax.f32 %v406_v0, 0.0 }
 0x1ce   :  { %v410_v2 = vadd.f32 %v409_v1, %v307_v59  ;;  %v411_v3 = vpop.f32.mrb[5].mxu1 }
 0x1cf   :  { %v412_v5 = vadd.f32 %v411_v3, %v307_v59 }
 0x1d0   :  { %v428_v7 = vmax.f32 %v410_v2, 0.0 }
 0x1d1   :  { %v429_v9 = vmax.f32 %v412_v5, 0.0  ;;  %v415_v10 = vpop.f32.mrb[6].mxu1 }
 0x1d2   :  { %v597_v11 = vpack.c.bf16 %v428_v7, %v426_v6  ;;  %v417_v12 = vpop.f32.mrb[7].mxu1  ;;  %v416_v14 = vadd.f32 %v415_v10, %v312_v4 }
 0x1d3   :  { %v595_v13 = vpack.c.bf16 %v429_v9, %v427_v8  ;;  %v418_v16 = vadd.f32 %v417_v12, %v312_v4 }
 0x1d4   :  { %v430_v21 = vmax.f32 %v416_v14, 0.0 }
 0x1d5   :  { %v421_v17 = vpop.f32.mrb[8].mxu1  ;;  %596 = vmatprep.subr.bf16.mxu0 %v595_v13  ;;  %v431_v23 = vmax.f32 %v418_v16, 0.0 }
 0x1d6   :  { %v422_v18 = vadd.f32 %v421_v17, %v317_v15  ;;  %v423_v19 = vpop.f32.mrb[9].mxu1  ;;  %598 = vmatpush1.bf16.msra.mxu0 %v597_v11 }
 0x1d7   :  { %v424_v20 = vadd.f32 %v423_v19, %v317_v15 }
 0x1d8   :  { %v432_v22 = vmax.f32 %v422_v18, 0.0 }
 0x1d9   :  { %v433_v24 = vmax.f32 %v424_v20, 0.0 }
 0x1da   :  { %v601_v25 = vpack.c.bf16 %v432_v22, %v430_v21 }
 0x1db   :  { %v599_v26 = vpack.c.bf16 %v433_v24, %v431_v23 }
 0x1dd   :  { %600 = vmatprep.subr.bf16.mxu0 %v599_v26 }
 0x1de   :  { %602 = vmatpush1.bf16.msra.mxu0 %v601_v25 }
 0x1e1   :  { %586 = vmatmul.mubr.msk.f32.vlgmr.msra.gmra.mrb[8].mxu0 %vm209_vm2, %v460_v27 }
 0x2b4   :  { %v545_v29 = vpop.f32.mrb[8].mxu0 }
 0x2b5   :  { %v546_v30 = vadd.f32 %v545_v29, %v442_v28  ;;  %v547_v31 = vpop.f32.mrb[9].mxu0 }
 0x2b6   :  { %v548_v32 = vadd.f32 %v547_v31, %v442_v28 }
 0x2b8   :  { %v552_v33 = vcombine.low %v546_v30, %v548_v32 }
 0x2ba   :  { %555 = vst [vmem:[#allocation2 + $0x8] sm:$0xff] %v552_v33 }
 0x2bb   :  { %623 = shalt.err (!%p620_p4)
}
 0x2bc   :  { %s624_s25 = scalar_lea.hbm %s776_s5, 256 }
 0x2bd   :  { %p625_p5 = scmp.ne.s32.totalorder %s776_s5, %s624_s25  ;;  %p628_p6 = scmp.lt.u32.totalorder %s624_s25, %s776_s5 }
 0x2bf   :  { %p630_p7 = pnand %p628_p6, %p625_p5 }
 0x2c1   :  { %633 = shalt.err (!%p630_p7)
}
 0x2c2   :  { %s639_s30 = smov 128   ;;  %s640_s6 = smov 8  }
 0x2c3   :  { %567 = dma.vmem_to_hbm [thread:$0]  %s562_s21, 256, %s776_s5, [#allocation3], %s639_s30, %s639_s30, %s640_s6  }
 0x2c4   :  { %634 = dma.done.wait [#allocation3], 256  }
 0x2c5   :  { %635 = vsyncadd [#allocation3], 4294967040 }
 0x2c6   :  { %571 = vsyncpa [#allocation3], 1 }

</bundles_post_ra>
